<compile_context>
chip_gen: v7x
topology: tpu7x:2x2x1
jax: 0.10.0
libtpu: 0.0.40
codegen_flags: <defaults>
</compile_context>

<pallas_src>
import jax
import jax.numpy as jnp
from jax.experimental import pallas as pl
from jax.experimental.pallas import tpu as pltpu

_LANE = 128
_SUBLANE = 8


def _round_up(x, m):
    return -(-x // m) * m


def _make_kernel(block_b, h_pad, d_pad, d_chunk):
    n_chunks = d_pad // d_chunk

    def kernel(x12_ref, w_ref, b_ref, y_ref, out_ref):
        # (2, block_b, H) -> (2*block_b, H): layout-preserving merge of the
        # leading dims (block_b % 8 == 0, H % 128 == 0).
        x = x12_ref[...].reshape(2 * block_b, h_pad)

        def chunk_sim(start):
            w_c = w_ref[:, pl.ds(start, d_chunk)]              # (H, Dc)
            b_c = b_ref[:, pl.ds(start, d_chunk)]              # (1, Dc) f32
            # One MXU matmul for both sides, f32 accumulation.
            reps = jnp.dot(x, w_c, preferred_element_type=jnp.float32) + b_c
            r1 = reps[:block_b]                                 # sublane-aligned slices
            r2 = reps[block_b:]
            return jnp.sum(r1 * r2, axis=-1, keepdims=True)     # (block_b, 1) f32

        if n_chunks == 1:
            sim = chunk_sim(0)
        else:
            def body(c, acc):
                start = pl.multiple_of(c * d_chunk, d_chunk)
                return acc + chunk_sim(start)

            sim = jax.lax.fori_loop(0, n_chunks, body,
                                    jnp.zeros((block_b, 1), jnp.float32))

        # Numerically stable BCEWithLogitsLoss per-row term; reduction='sum'
        # (and removal of batch-padding rows) happens in the wrapper.
        y = y_ref[...]                                           # (block_b, 1) f32
        out_ref[...] = (jnp.maximum(sim, 0.0) - sim * y
                        + jnp.log1p(jnp.exp(-jnp.abs(sim))))

    return kernel


def contrastive_tension_loss(x1, x2, w, b, labels, *, block_b=None, d_chunk=None):
    """x1, x2: (B, H) pooled features; w: (H, D); b: (D,); labels: (B,)."""
    B, H = x1.shape
    H_w, D = w.shape
    assert H == H_w and x2.shape == (B, H) and labels.shape[0] == B

    # ---- D chunking / lane alignment (zero padding is loss-neutral) ----------
    if d_chunk is None:
        d_chunk = 512
    d_chunk = _round_up(min(d_chunk, D), _LANE)
    if D <= d_chunk:
        D_pad = _round_up(D, _LANE)
        d_chunk = D_pad
    else:
        D_pad = _round_up(D, d_chunk)
    H_pad = _round_up(H, _LANE)

    # ---- VMEM budget (per-chip) -----------------------------------------------
    try:
        vmem_cap = int(pltpu.get_tpu_info().vmem_capacity_bytes)
    except Exception:
        vmem_cap = 64 * 1024 * 1024
    vmem_limit = min(100 * 1024 * 1024, (vmem_cap * 3) // 4)

    # ---- batch tile choice ------------------------------------------------------
    B_eff = _round_up(B, _SUBLANE)
    if block_b is None:
        if B_eff <= 256:
            block_b = B_eff                         # tiny batch: one step
        else:
            # >= 2 grid steps so the "parallel" axis shards across v7x's two
            # TensorCores; 256-row MXU alignment; cap at 1024 rows.
            block_b = min(1024, _round_up(pl.cdiv(B_eff, 2), 256))
    block_b = max(_SUBLANE, _round_up(block_b, _SUBLANE))

    x_item = x1.dtype.itemsize
    w_item = w.dtype.itemsize

    def _footprint(bb):
        x_bytes = 2 * (2 * bb * H_pad * x_item)      # double-buffered stacked x
        w_bytes = H_pad * D_pad * w_item             # single-buffered resident W
        b_bytes = D_pad * 4
        yo_bytes = 4 * bb * _LANE * 4                # labels + out, lane-padded, 2 bufs
        inter = 3 * (2 * bb) * d_chunk * 4           # reps chunk + product headroom
        return x_bytes + w_bytes + b_bytes + yo_bytes + inter

    while block_b > _SUBLANE and _footprint(block_b) > 0.8 * vmem_limit:
        block_b = max(_SUBLANE, _round_up(block_b // 2, _SUBLANE))

    B_pad = _round_up(B, block_b)

    # ---- pad + pack inputs ------------------------------------------------------
    if H_pad != H:
        x1 = jnp.pad(x1, ((0, 0), (0, H_pad - H)))
        x2 = jnp.pad(x2, ((0, 0), (0, H_pad - H)))
        w = jnp.pad(w, ((0, H_pad - H), (0, 0)))
    if D_pad != D:
        w = jnp.pad(w, ((0, 0), (0, D_pad - D)))
        b = jnp.pad(b, ((0, D_pad - D),))
    if B_pad != B:
        # Padded rows produce garbage per-row losses; sliced off before the sum.
        x1 = jnp.pad(x1, ((0, B_pad - B), (0, 0)))
        x2 = jnp.pad(x2, ((0, B_pad - B), (0, 0)))

    x12 = jnp.stack([x1, x2], axis=0)                     # (2, B_pad, H_pad)
    b2d = b.astype(jnp.float32).reshape(1, D_pad)         # pre-cast once in wrapper
    y = labels.astype(jnp.float32).reshape(B, 1)
    if B_pad != B:
        y = jnp.pad(y, ((0, B_pad - B), (0, 0)))

    grid = B_pad // block_b
    kernel = _make_kernel(block_b, H_pad, D_pad, d_chunk)

    cost = pl.CostEstimate(
        flops=2 * (2 * B_pad) * H_pad * D_pad + 8 * B_pad * D_pad,
        transcendentals=2 * B_pad,
        bytes_accessed=(x12.size * x12.dtype.itemsize
                        + w.size * w.dtype.itemsize
                        + b2d.size * 4 + y.size * 4 + B_pad * 4),
    )

    def _call(single_buffer_weights):
        resident = {"pipeline_mode": pl.Buffered(1)} if single_buffer_weights else {}
        return pl.pallas_call(
            kernel,
            out_shape=jax.ShapeDtypeStruct((B_pad, 1), jnp.float32),
            grid_spec=pltpu.PrefetchScalarGridSpec(
                num_scalar_prefetch=0,
                grid=(grid,),
                in_specs=[
                    pl.BlockSpec((2, block_b, H_pad), lambda i: (0, i, 0)),      # x1/x2 stacked
                    pl.BlockSpec((H_pad, D_pad), lambda i: (0, 0), **resident),  # shared W (resident)
                    pl.BlockSpec((1, D_pad), lambda i: (0, 0), **resident),      # shared bias (f32)
                    pl.BlockSpec((block_b, 1), lambda i: (i, 0)),                # labels tile
                ],
                out_specs=pl.BlockSpec((block_b, 1), lambda i: (i, 0)),
            ),
            compiler_params=pltpu.CompilerParams(
                dimension_semantics=("parallel",),   # batch blocks independent (v7x dual-TC)
                vmem_limit_bytes=int(vmem_limit),
            ),
            cost_estimate=cost,
        )(x12, w, b2d, y)

    try:
        out = _call(True)
    except Exception:
        # pl.Buffered(1) not supported on this jax/libtpu combo -> default buffering.
        out = _call(False)

    # reduction='sum'; drop batch-padding rows before the sum.
    return jnp.sum(out[:B, 0])


def _reference(x1, x2, w, b, labels):
    hp = jax.lax.Precision.HIGHEST
    w32 = w.astype(jnp.float32)
    b32 = b.astype(jnp.float32)
    reps1 = jnp.dot(x1.astype(jnp.float32), w32, precision=hp) + b32
    reps2 = jnp.dot(x2.astype(jnp.float32), w32, precision=hp) + b32
    sim = jnp.sum(reps1 * reps2, axis=-1)
    y = labels.astype(jnp.float32)
    per = jnp.maximum(sim, 0.0) - sim * y + jnp.log1p(jnp.exp(-jnp.abs(sim)))
    return jnp.sum(per)


if __name__ == "__main__":
    key = jax.random.PRNGKey(0)
    # Small, deliberately unaligned shapes: exercises H/D zero-padding, batch
    # padding (B not a multiple of block_b), a 4-step batch pipeline, and the
    # 2-chunk in-kernel D loop.
    B, H, D = 50, 96, 192
    block_b, d_chunk = 16, 128

    k1, k2, kw, kb, kl = jax.random.split(key, 5)
    # Pooled sentence features for the two sides of each pair (bf16 -> MXU native).
    x1 = jax.random.normal(k1, (B, H), dtype=jnp.float32).astype(jnp.bfloat16)
    x2 = jax.random.normal(k2, (B, H), dtype=jnp.float32).astype(jnp.bfloat16)

    # Encoder projection; model1 = copy.deepcopy(model2) -> identical weights,
    # so a single (W, b) is passed to the kernel.
    w = (jax.random.normal(kw, (H, D), dtype=jnp.float32)
         * (1.0 / jnp.sqrt(H))).astype(jnp.bfloat16)
    b = jax.random.normal(kb, (D,), dtype=jnp.float32) * 0.01

    # Labels from ContrastiveTensionDataLoader: 1 for positive pair, 0 otherwise.
    labels = (jax.random.uniform(kl, (B,)) < 0.5).astype(jnp.float32)

    loss = contrastive_tension_loss(x1, x2, w, b, labels,
                                    block_b=block_b, d_chunk=d_chunk)
    loss = jax.block_until_ready(loss)

    ref = _reference(x1, x2, w, b, labels)
    assert jnp.allclose(loss, ref, rtol=1e-2, atol=1e-2), (loss, ref)

    print("KERNEL_OK")
</pallas_src>

<mosaic_0001>
module attributes {stable_mosaic.version = 11 : i64} {
  func.func @kernel(%arg0: i32, %arg1: memref<2x16x128xbf16, #tpu.memory_space<vmem>>, %arg2: memref<128x256xbf16, #tpu.memory_space<vmem>>, %arg3: memref<1x256xf32, #tpu.memory_space<vmem>>, %arg4: memref<16x1xf32, #tpu.memory_space<vmem>>, %arg5: memref<16x1xf32, #tpu.memory_space<vmem>>) attributes {dimension_semantics = [#tpu.dimension_semantics<parallel>], iteration_bounds = array<i64: 4>, scalar_prefetch = 0 : i64, scratch_operands = 0 : i64, tpu.core_type = #tpu.core_type<tc>, window_params = [{transform_indices = @transform_0, window_bounds = array<i64: 2, 16, 128>}, {pipeline_mode = #tpu.pipeline_mode<synchronous>, transform_indices = @transform_1, window_bounds = array<i64: 128, 256>}, {pipeline_mode = #tpu.pipeline_mode<synchronous>, transform_indices = @transform_2, window_bounds = array<i64: 1, 256>}, {transform_indices = @transform_3, window_bounds = array<i64: 16, 1>}, {transform_indices = @transform_4, window_bounds = array<i64: 16, 1>}]} {
    %c0 = arith.constant 0 : index
    %c0_0 = arith.constant 0 : index
    %c0_1 = arith.constant 0 : index
    %0 = vector.load %arg1[%c0, %c0_0, %c0_1] : memref<2x16x128xbf16, #tpu.memory_space<vmem>>, vector<2x16x128xbf16>
    %1 = vector.shape_cast %0 : vector<2x16x128xbf16> to vector<32x128xbf16>
    %cst = arith.constant 0.000000e+00 : f32
    %2 = vector.broadcast %cst : f32 to vector<16x1xf32>
    %c0_i32 = arith.constant 0 : i32
    %c2_i32 = arith.constant 2 : i32
    %3 = arith.addi %c0_i32, %c2_i32 : i32
    %c1_i32 = arith.constant 1 : i32
    %4 = scf.for %arg6 = %c0_i32 to %3 step %c1_i32 iter_args(%arg7 = %2) -> (vector<16x1xf32>)  : i32 {
      %c128_i32 = arith.constant 128 : i32
      %17 = arith.muli %arg6, %c128_i32 : i32
      %18 = tpu.assume_multiple %17, 128 : i32
      %c0_9 = arith.constant 0 : index
      %19 = arith.index_cast %18 : i32 to index
      %20 = vector.load %arg2[%c0_9, %19] : memref<128x256xbf16, #tpu.memory_space<vmem>>, vector<128x128xbf16>
      %c0_10 = arith.constant 0 : index
      %21 = arith.index_cast %18 : i32 to index
      %22 = vector.load %arg3[%c0_10, %21] : memref<1x256xf32, #tpu.memory_space<vmem>>, vector<1x128xf32>
      %cst_11 = arith.constant dense<0.000000e+00> : vector<32x128xf32>
      %23 = tpu.matmul %1, %20, %cst_11 {dimension_numbers = #tpu.dot_dimension_numbers<[1], [0], [0], [1], [0, 0, 1, 1], [], []>} : vector<32x128xbf16>, vector<128x128xbf16>, vector<32x128xf32> -> vector<32x128xf32>
      %24 = vector.broadcast %22 : vector<1x128xf32> to vector<32x128xf32>
      %25 = arith.addf %23, %24 : vector<32x128xf32>
      %26 = vector.extract_strided_slice %25 {offsets = [0, 0], sizes = [16, 128], strides = [1, 1]} : vector<32x128xf32> to vector<16x128xf32>
      %27 = vector.extract_strided_slice %25 {offsets = [16, 0], sizes = [16, 128], strides = [1, 1]} : vector<32x128xf32> to vector<16x128xf32>
      %28 = arith.mulf %26, %27 : vector<16x128xf32>
      %cst_12 = arith.constant dense<0.000000e+00> : vector<16xf32>
      %29 = vector.multi_reduction <add>, %28, %cst_12 [1] : vector<16x128xf32> to vector<16xf32>
      %30 = vector.shape_cast %29 : vector<16xf32> to vector<16x1xf32>
      %31 = arith.addf %arg7, %30 : vector<16x1xf32>
      scf.yield %31 : vector<16x1xf32>
    }
    %c2_i32_2 = arith.constant 2 : i32
    %c0_3 = arith.constant 0 : index
    %c0_4 = arith.constant 0 : index
    %5 = vector.load %arg4[%c0_3, %c0_4] : memref<16x1xf32, #tpu.memory_space<vmem>>, vector<16x1xf32>
    %cst_5 = arith.constant 0.000000e+00 : f32
    %6 = vector.broadcast %cst_5 : f32 to vector<16x1xf32>
    %7 = arith.maximumf %4, %6 : vector<16x1xf32>
    %8 = arith.mulf %4, %5 : vector<16x1xf32>
    %9 = arith.subf %7, %8 : vector<16x1xf32>
    %10 = math.absf %4 : vector<16x1xf32>
    %cst_6 = arith.constant 0.000000e+00 : f32
    %11 = vector.broadcast %cst_6 : f32 to vector<16x1xf32>
    %12 = arith.subf %11, %10 : vector<16x1xf32>
    %13 = math.exp %12 : vector<16x1xf32>
    %14 = math.log1p %13 : vector<16x1xf32>
    %15 = arith.addf %9, %14 : vector<16x1xf32>
    %c0_7 = arith.constant 0 : index
    %c0_8 = arith.constant 0 : index
    %16 = vector.load %arg5[%c0_7, %c0_8] : memref<16x1xf32, #tpu.memory_space<vmem>>, vector<16x1xf32>
    tpu.vector_store %arg5[%c0_7, %c0_8], %15 {strides = array<i32>} : memref<16x1xf32, #tpu.memory_space<vmem>>, vector<16x1xf32>,
    return
  }
  func.func @transform_0(%arg0: i32) -> (i32, i32, i32) {
    %c0_i32 = arith.constant 0 : i32
    %c0_i32_0 = arith.constant 0 : i32
    %c0_i32_1 = arith.constant 0 : i32
    return %c0_i32, %arg0, %c0_i32_0 : i32, i32, i32
  }
  func.func @transform_1(%arg0: i32) -> (i32, i32) {
    %c0_i32 = arith.constant 0 : i32
    %c0_i32_0 = arith.constant 0 : i32
    %c0_i32_1 = arith.constant 0 : i32
    return %c0_i32, %c0_i32_0 : i32, i32
  }
  func.func @transform_2(%arg0: i32) -> (i32, i32) {
    %c0_i32 = arith.constant 0 : i32
    %c0_i32_0 = arith.constant 0 : i32
    %c0_i32_1 = arith.constant 0 : i32
    return %c0_i32, %c0_i32_0 : i32, i32
  }
  func.func @transform_3(%arg0: i32) -> (i32, i32) {
    %c0_i32 = arith.constant 0 : i32
    %c0_i32_0 = arith.constant 0 : i32
    return %arg0, %c0_i32 : i32, i32
  }
  func.func @transform_4(%arg0: i32) -> (i32, i32) {
    %c0_i32 = arith.constant 0 : i32
    %c0_i32_0 = arith.constant 0 : i32
    return %arg0, %c0_i32 : i32, i32
  }
}

module attributes {stable_mosaic.version = 11 : i64} {
  func.func @kernel(%arg0: i32, %arg1: memref<2x16x128xbf16, #tpu.memory_space<vmem>>, %arg2: memref<128x256xbf16, #tpu.memory_space<vmem>>, %arg3: memref<1x256xf32, #tpu.memory_space<vmem>>, %arg4: memref<16x1xf32, #tpu.memory_space<vmem>>, %arg5: memref<16x1xf32, #tpu.memory_space<vmem>>) attributes {dimension_semantics = [#tpu.dimension_semantics<parallel>], iteration_bounds = array<i64: 4>, scalar_prefetch = 0 : i64, scratch_operands = 0 : i64, tpu.core_type = #tpu.core_type<tc>, window_params = [{transform_indices = @transform_0, window_bounds = array<i64: 2, 16, 128>}, {pipeline_mode = #tpu.pipeline_mode<synchronous>, transform_indices = @transform_1, window_bounds = array<i64: 128, 256>}, {pipeline_mode = #tpu.pipeline_mode<synchronous>, transform_indices = @transform_2, window_bounds = array<i64: 1, 256>}, {transform_indices = @transform_3, window_bounds = array<i64: 16, 1>}, {transform_indices = @transform_4, window_bounds = array<i64: 16, 1>}]} {
    %c0 = arith.constant 0 : index
    %c0_0 = arith.constant 0 : index
    %c0_1 = arith.constant 0 : index
    %0 = vector.load %arg1[%c0, %c0_0, %c0_1] : memref<2x16x128xbf16, #tpu.memory_space<vmem>>, vector<2x16x128xbf16>
    %1 = vector.shape_cast %0 : vector<2x16x128xbf16> to vector<32x128xbf16>
    %cst = arith.constant 0.000000e+00 : f32
    %2 = vector.broadcast %cst : f32 to vector<16x1xf32>
    %c0_i32 = arith.constant 0 : i32
    %c2_i32 = arith.constant 2 : i32
    %3 = arith.addi %c0_i32, %c2_i32 : i32
    %c1_i32 = arith.constant 1 : i32
    %4 = scf.for %arg6 = %c0_i32 to %3 step %c1_i32 iter_args(%arg7 = %2) -> (vector<16x1xf32>)  : i32 {
      %c128_i32 = arith.constant 128 : i32
      %17 = arith.muli %arg6, %c128_i32 : i32
      %18 = tpu.assume_multiple %17, 128 : i32
      %c0_9 = arith.constant 0 : index
      %19 = arith.index_cast %18 : i32 to index
      %20 = vector.load %arg2[%c0_9, %19] : memref<128x256xbf16, #tpu.memory_space<vmem>>, vector<128x128xbf16>
      %c0_10 = arith.constant 0 : index
      %21 = arith.index_cast %18 : i32 to index
      %22 = vector.load %arg3[%c0_10, %21] : memref<1x256xf32, #tpu.memory_space<vmem>>, vector<1x128xf32>
      %cst_11 = arith.constant dense<0.000000e+00> : vector<32x128xf32>
      %23 = tpu.matmul %1, %20, %cst_11 {dimension_numbers = #tpu.dot_dimension_numbers<[1], [0], [0], [1], [0, 0, 1, 1], [], []>} : vector<32x128xbf16>, vector<128x128xbf16>, vector<32x128xf32> -> vector<32x128xf32>
      %24 = vector.broadcast %22 : vector<1x128xf32> to vector<32x128xf32>
      %25 = arith.addf %23, %24 : vector<32x128xf32>
      %26 = vector.extract_strided_slice %25 {offsets = [0, 0], sizes = [16, 128], strides = [1, 1]} : vector<32x128xf32> to vector<16x128xf32>
      %27 = vector.extract_strided_slice %25 {offsets = [16, 0], sizes = [16, 128], strides = [1, 1]} : vector<32x128xf32> to vector<16x128xf32>
      %28 = arith.mulf %26, %27 : vector<16x128xf32>
      %cst_12 = arith.constant dense<0.000000e+00> : vector<16xf32>
      %29 = vector.multi_reduction <add>, %28, %cst_12 [1] : vector<16x128xf32> to vector<16xf32>
      %30 = vector.shape_cast %29 : vector<16xf32> to vector<16x1xf32>
      %31 = arith.addf %arg7, %30 : vector<16x1xf32>
      scf.yield %31 : vector<16x1xf32>
    }
    %c2_i32_2 = arith.constant 2 : i32
    %c0_3 = arith.constant 0 : index
    %c0_4 = arith.constant 0 : index
    %5 = vector.load %arg4[%c0_3, %c0_4] : memref<16x1xf32, #tpu.memory_space<vmem>>, vector<16x1xf32>
    %cst_5 = arith.constant 0.000000e+00 : f32
    %6 = vector.broadcast %cst_5 : f32 to vector<16x1xf32>
    %7 = arith.maximumf %4, %6 : vector<16x1xf32>
    %8 = arith.mulf %4, %5 : vector<16x1xf32>
    %9 = arith.subf %7, %8 : vector<16x1xf32>
    %10 = math.absf %4 : vector<16x1xf32>
    %cst_6 = arith.constant 0.000000e+00 : f32
    %11 = vector.broadcast %cst_6 : f32 to vector<16x1xf32>
    %12 = arith.subf %11, %10 : vector<16x1xf32>
    %13 = math.exp %12 : vector<16x1xf32>
    %14 = math.log1p %13 : vector<16x1xf32>
    %15 = arith.addf %9, %14 : vector<16x1xf32>
    %c0_7 = arith.constant 0 : index
    %c0_8 = arith.constant 0 : index
    %16 = vector.load %arg5[%c0_7, %c0_8] : memref<16x1xf32, #tpu.memory_space<vmem>>, vector<16x1xf32>
    tpu.vector_store %arg5[%c0_7, %c0_8], %15 {strides = array<i32>} : memref<16x1xf32, #tpu.memory_space<vmem>>, vector<16x1xf32>,
    return
  }
  func.func @transform_0(%arg0: i32) -> (i32, i32, i32) {
    %c0_i32 = arith.constant 0 : i32
    %c0_i32_0 = arith.constant 0 : i32
    %c0_i32_1 = arith.constant 0 : i32
    return %c0_i32, %arg0, %c0_i32_0 : i32, i32, i32
  }
  func.func @transform_1(%arg0: i32) -> (i32, i32) {
    %c0_i32 = arith.constant 0 : i32
    %c0_i32_0 = arith.constant 0 : i32
    %c0_i32_1 = arith.constant 0 : i32
    return %c0_i32, %c0_i32_0 : i32, i32
  }
  func.func @transform_2(%arg0: i32) -> (i32, i32) {
    %c0_i32 = arith.constant 0 : i32
    %c0_i32_0 = arith.constant 0 : i32
    %c0_i32_1 = arith.constant 0 : i32
    return %c0_i32, %c0_i32_0 : i32, i32
  }
  func.func @transform_3(%arg0: i32) -> (i32, i32) {
    %c0_i32 = arith.constant 0 : i32
    %c0_i32_0 = arith.constant 0 : i32
    return %arg0, %c0_i32 : i32, i32
  }
  func.func @transform_4(%arg0: i32) -> (i32, i32) {
    %c0_i32 = arith.constant 0 : i32
    %c0_i32_0 = arith.constant 0 : i32
    return %arg0, %c0_i32 : i32, i32
  }
}

</mosaic_0001>

<bundles_post_ra>
// kernel: tpu_custom_call.1
= control target key start
LH: loop header
LB: loop body
LE: loop exit
PB: predicated region body
PF: predicated region fallthrough
CT: control target
= control target key end

     0   :  { %9 = vsyncpa [#allocation4], 0  ;;  %s835_s15 = smov 0   ;;  %s837_s16 = smov 0   ;;  %s977_s0 = inlined_call_operand.vmem [shape: bf16[2,64,128], index: 0, kind: input, shape index: {}]   ;;  %s978_s1 = inlined_call_operand.hbm [shape: bf16[128,256], index: 1, kind: input, shape index: {}]   ;;  %s979_s2 = inlined_call_operand.vmem [shape: f32[1,256], index: 2, kind: input, shape index: {}]   ;;  %s980_s3 = inlined_call_operand.vmem [shape: f32[64,1], index: 3, kind: input, shape index: {}]   ;;  %s981_s4 = inlined_call_operand.vmem [shape: f32[64,1], index: 4, kind: output, shape index: {}]  }
   0x1   :  { %s839_s17 = smov 0  }
   0x2 LB: > { %s589_s18 = sadd.s32 4294967295, %s793_s17   ;;  %s852_s19 = sadd.s32 1, %s793_s17   ;;  %s793_s17 = sphi %s839_s17, %s995_s17   ;;  %s789_s16 = sphi %s837_s16, %s994_s16   ;;  %s785_s15 = sphi %s835_s15, %s993_s15  }
   0x3   : > { %s19_s20 = ssub.s32 %s793_s17, %s852_s19  ;;  %s22_s21 = sadd.s32 1, %s789_s16 }
   0x4   : > { %p20_p0 = scmp.eq.s32.totalorder %s19_s20, 0  ;;  %p29_p1 = scmp.ne.s32.totalorder %s789_s16, %s785_s15 }
   0x5   : > { %p30_p2 = scmp.eq.s32.totalorder %s793_s17, 0  ;;  %p591_p3 = scmp.ge.s32.totalorder %s793_s17, 1 }
   0x6   : > { %s862_s22 = scalar_select %p20_p0, %s789_s16, %s22_s21  }
   0x7   : > { %p864_p4 = por %p30_p2, %p29_p1  ;;  %p140_p5 = scmp.lt.s32.totalorder %s793_s17, 5 }
   0x8   : > { %p871_p6 = scmp.eq.s32.totalorder %s589_s18, 0  ;;  %s807_s26 = smov [#allocation3]  }
   0x9   : > { %s985_s23 = scalar_select %p864_p4, 1, 0 }
   0xa   : > { %s986_s24 = scalar_select %p871_p6, 1, 0 }
   0xb   : > { %p875_p7 = pnand %p591_p3, %p140_p5  ;;  %s152_s27 = sshll.u32 %s807_s26, 4  ;;  %s153_s27 = int_to_ptr.vmem [resolvable:$true] %s152_s27 }
   0xc   : > { %s727_s5 = scalar_lea.hbm %s978_s1, 2048 }
   0xd   : > { %s987_s25 = scalar_select %p875_p7, 1, 0 }
   0xe   : > { %p654_p8 = pneg %p875_p7  ;;  %p728_p10 = scmp.ne.s32.totalorder %s978_s1, %s727_s5 }
   0xf   : > { %p734_p0 = scmp.lt.u32.totalorder %s727_s5, %s978_s1 }
  0x10   : > { %p883_p9 = pnand %p871_p6, %p654_p8 }
  0x12   : > { %p729_p11 = pneg %p883_p9 }
  0x14   : > { %p730_p12 = pnand %p729_p11, %p728_p10 }
  0x16   : > { %p731_p13 = pneg %p730_p12 }
  0x18   : > { %p736_p1 = pnand %p734_p0, %p731_p13 }
  0x1a   : > { %739 = shalt.err (!%p736_p1)
}
  0x1b   : > { %s740_s10 = scalar_lea.vmem %s153_s27, 2048  ;;  %p748_p8 = scmp.lt.s32.totalorder %s153_s27, %s153_s27 }
  0x1c   : > { %p741_p2 = scmp.ne.s32.totalorder %s153_s27, %s740_s10  ;;  %p749_p6 = scmp.lt.s32.totalorder %s740_s10, %s740_s10 }
  0x1e   : > { %p743_p3 = pnand %p741_p2, %p729_p11  ;;  %p750_p7 = por %p749_p6, %p748_p8 }
  0x20   : > { %p744_p5 = pneg %p743_p3 }
  0x22   : > { %p751_p4 = pnand %p750_p7, %p744_p5 }
  0x24   : > { %754 = shalt.err (!%p751_p4)
}
  0x25   : > { %s808_s11 = smov 128   ;;  %s809_s12 = smov 8  }
  0x26   : > { %657 = dma.hbm_to_vmem [thread:$0]  (!%p883_p9), %s978_s1, 2048, %s153_s27, [#allocation4], %s808_s11, %s808_s11, %s809_s12  }
  0x27   : > { %p593_p10 = scmp.ge.s32.totalorder %s793_s17, 4 }
  0x28   : > { %p989_p12 = scmp.ne.s32.totalorder (!%p593_p10), %s985_s23, 0 }
  0x29   : > { %165 = sbr.rel (%p593_p10) target bundleno = 55 (0x37), region = 24 }
  0x30   : > { %168 = sbr.rel (!%p989_p12) target bundleno = 55 (0x37), region = 28  ;;  %s170_s20 = sand.u32 (%p989_p12), 1, %s789_s16  }
  0x31   : > { %s619_s21 = sshll.u32 (%p989_p12), %s793_s17, 3  ;;  %s594_s26 = sshll.u32 (%p989_p12), %s170_s20, 4 }
  0x32   : > { %s175_s5 = scalar_lea.vmem (%p989_p12), %s977_s0, %s619_s21  ;;  %s172_s28 = scalar_lea.vmem (%p989_p12), [#allocation2], %s594_s26 }
  0x33   : > { %v191_v0 = vld [vmem:[%s175_s5] sm:$0xff] (%p989_p12)  }
  0x34   : > { %v195_v1 = vld [vmem:[%s175_s5 + $0x20] sm:$0xff] (%p989_p12)   ;;  %192 = vst [vmem:[%s172_s28] sm:$0xff] (%p989_p12), %v191_v0  }
  0x35   : > { %196 = vst [vmem:[%s172_s28 + $0x8] sm:$0xff] (%p989_p12), %v195_v1  }
  0x37 PF: > { %p990_p4 = scmp.ne.s32.totalorder %s987_s25, 0 }
  0x38   : > { %s244_s23 = sand.u32 (!%p990_p4), 1, %s785_s15   ;;  %p991_p6 = scmp.ne.s32.totalorder (!%p990_p4), %s986_s24, 0 }
  0x39   : > { %241 = sbr.rel (%p990_p4) target bundleno = 509 (0x1fd), region = 73  ;;  %s598_s27 = sshll.u32 (!%p990_p4), %s244_s23, 4 }
  0x3a   : > { %s246_s6 = scalar_lea.vmem (!%p990_p4), [#allocation2], %s598_s27 }
  0x40   : > { %780 = dma.done.wait (%p991_p6), [#allocation4], 2048  }
  0x41   : > { %782 = vsyncadd (%p991_p6), [#allocation4], 4294965248  ;;  %s600_s7 = sshll.u32 %s589_s18, 1  ;;  %v930_v2 = vld [vmem:[%s246_s6] sm:$0xf]  ;;  %v938_v6 = vmov 0.0  }
  0x42   : > { %p280_p7 = scmp.lt.s32.totalorder %s600_s7, 7  ;;  %v932_v3 = vld [vmem:[%s246_s6 + $0x4] sm:$0xf]  ;;  %v934_v4 = vld [vmem:[%s246_s6 + $0x8] sm:$0xf]  ;;  %v799_v7 = vmov 0.0  }
  0x43   : > { %v936_v5 = vld [vmem:[%s246_s6 + $0xc] sm:$0xf]  ;;  %s940_s17 = smov 0  }
  0x44   : > { %s997_s7 = smov (!%p280_p7, %s600_s7), 7 }
  0x45   : > { %s601_s8 = sshll.u32 %s997_s7, 3 }
  0x46   : > { %s923_s25 = scalar_lea.vmem %s980_s3, %s601_s8  ;;  %s928_s12 = scalar_lea.vmem %s981_s4, %s601_s8 }
  0x47 LB: >> { %v607_v8 = vcombine.low %v930_v2, %v932_v3  ;;  %s604_s18 = sshll.u32 %s805_s17, 7  ;;  %v608_v17 = vcombine.low %v934_v4, %v936_v5  ;;  %s301_s17 = sadd.s32 1, %s805_s17   ;;  %s805_s17 = sphi %s940_s17, %s301_s17   ;;  %v801_v7 = vphi %v799_v7, %v800_v7   ;;  %v797_v6 = vphi %v938_v6, %v992_v6  }
  0x48   : >> { %s949_s24 = sshra.s32 %s604_s18, 7  ;;  %p298_p9 = scmp.ge.s32.totalorder %s301_s17, 2  }
  0x49   : >> { %646 = vmatprep.mubr.bf16.mxu0 %v607_v8  ;;  %s605_s13 = sshll.u32 %s949_s24, 2  ;;  %s325_s26 = scalar_lea.vmem %s979_s2, %s949_s24  ;;  %v450_v45 = vld [vmem:[%s923_s25] sm:$0xff] (%p298_p9)  ;;  %v451_v46 = vld [vmem:[%s923_s25 + $0x8] sm:$0xff] (%p298_p9)  ;;  %vm486_vm2 = vcmask (%p298_p9), 7168  }
  0x4a   : >> { %s308_s14 = scalar_lea.vmem [#allocation3], %s605_s13  ;;  %v606_v18 = vld [vmem:[%s325_s26] ss:$0 sm:$0xff] }
  0x4b   : >> { %v711_v9 = vld [vmem:[%s308_s14] ss:$8 sps:$4 sm:$0xff]   ;;  %v712_v10 = vld [vmem:[%s308_s14 + $0x10] ss:$8 sps:$4 sm:$0xff]  }
  0x4c   : >> { %630 = vmatprep.subr.bf16.mxu0 %v711_v9  ;;  %v713_v11 = vld [vmem:[%s308_s14 + $0x20] ss:$8 sps:$4 sm:$0xff]   ;;  %v714_v12 = vld [vmem:[%s308_s14 + $0x30] ss:$8 sps:$4 sm:$0xff]  }
  0x4d   : >> { %631 = vmatpush3.bf16.msra.mxu0 %v711_v9  ;;  %v715_v13 = vld [vmem:[%s308_s14 + $0x40] ss:$8 sps:$4 sm:$0xff]   ;;  %v716_v14 = vld [vmem:[%s308_s14 + $0x50] ss:$8 sps:$4 sm:$0xff]  }
  0x4e   : >> { %632 = vmatprep.subr.bf16.mxu0 %v712_v10  ;;  %v717_v15 = vld [vmem:[%s308_s14 + $0x60] ss:$8 sps:$4 sm:$0xff]   ;;  %v718_v16 = vld [vmem:[%s308_s14 + $0x70] ss:$8 sps:$4 sm:$0xff]  }
  0x51   : >> { %633 = vmatpush3.bf16.msra.mxu0 %v712_v10 }
  0x52   : >> { %634 = vmatprep.subr.bf16.mxu0 %v713_v11 }
  0x55   : >> { %635 = vmatpush3.bf16.msra.mxu0 %v713_v11 }
  0x56   : >> { %636 = vmatprep.subr.bf16.mxu0 %v714_v12 }
  0x59   : >> { %637 = vmatpush3.bf16.msra.mxu0 %v714_v12 }
  0x5a   : >> { %638 = vmatprep.subr.bf16.mxu0 %v715_v13 }
  0x5d   : >> { %639 = vmatpush3.bf16.msra.mxu0 %v715_v13 }
  0x5e   : >> { %640 = vmatprep.subr.bf16.mxu0 %v716_v14 }
  0x61   : >> { %641 = vmatpush3.bf16.msra.mxu0 %v716_v14 }
  0x62   : >> { %642 = vmatprep.subr.bf16.mxu0 %v717_v15 }
  0x65   : >> { %643 = vmatpush3.bf16.msra.mxu0 %v717_v15 }
  0x66   : >> { %644 = vmatprep.subr.bf16.mxu0 %v718_v16 }
  0x69   : >> { %645 = vmatpush3.bf16.msra.mxu0 %v718_v16 }
  0x6c   : >> { %647 = vmatmul.mubr.bf16.vlgmr.msra.gmra.mrb[0].mxu0 %v608_v17 }
 0x13f   : >> { %v648_v19 = vpop.f32.mrb[0].mxu0 }
 0x140   : >> { %v436_v20 = vadd.f32 %v648_v19, %v606_v18  ;;  %v427_v21 = vpop.f32.mrb[1].mxu0 }
 0x141   : >> { %v428_v22 = vadd.f32 %v606_v18, %v427_v21  ;;  %v649_v23 = vpop.f32.mrb[2].mxu0 }
 0x142   : >> { %v439_v24 = vadd.f32 %v649_v23, %v606_v18  ;;  %v430_v25 = vpop.f32.mrb[3].mxu0 }
 0x143   : >> { %v431_v26 = vadd.f32 %v606_v18, %v430_v25  ;;  %v442_v27 = vmul.f32 %v436_v20, %v428_v22 }
 0x145   : >> { %444 = vadd.xlane.f32.xlu0 %v442_v27  ;;  %v443_v28 = vmul.f32 %v439_v24, %v431_v26 }
 0x149   : >> { %446 = vadd.xlane.f32.xlu0 %v443_v28 }
 0x1d2   : >> { %v445_v29 = vpop.xlane.xlu0 %444 }
 0x1d3   : >> { %v448_v30 = vadd.f32 %v801_v7, %v445_v29   ;;  %300 = sbr.rel (!%p298_p9) target bundleno = 71 (0x47), region = 129 }
 0x1d5   : >> { %v800_v7 = vmov %v448_v30   ;;  %v458_v33 = vand.u32 (%p298_p9), 2147483647, %v448_v30  ;;  %v452_v48 = vmax.f32 (%p298_p9), %v448_v30, 0.0  ;;  %v454_v49 = vmul.f32 (%p298_p9), %v450_v45, %v448_v30 }
 0x1d6   : >> { %v447_v31 = vpop.xlane.xlu0 %446 }
 0x1d7   : >> { %v449_v32 = vadd.f32 %v797_v6, %v447_v31   ;;  %v460_v35 = vsub.f32 (%p298_p9), 0.0, %v458_v33  ;;  %v456_v57 = vsub.f32 (%p298_p9), %v452_v48, %v454_v49 }
 0x1d9   : >> { %v992_v6 = vmov %v449_v32  ;;  %v459_v34 = vand.u32 (%p298_p9), 2147483647, %v449_v32  ;;  %v462_v37 = vmul.f32 (%p298_p9), 1.442695, %v460_v35  ;;  %v453_v52 = vmax.f32 (%p298_p9), %v449_v32, 0.0 }
 0x1da   : > { %v455_v53 = vmul.f32 %v451_v46, %v449_v32 }
 0x1db   : > { %v461_v36 = vsub.f32 0.0, %v459_v34  ;;  %719 = vpow2.f32 %v462_v37 }
 0x1dc   : > { %v457_v61 = vsub.f32 %v453_v52, %v455_v53 }
 0x1dd   : > { %v464_v38 = vmul.f32 1.442695, %v461_v36 }
 0x1df   : > { %721 = vpow2.f32 %v464_v38 }
 0x1e5   : > { %v720_v39 = vpop.eup %719 }
 0x1e6   : > { %v466_v41 = vadd.f32 1.0, %v720_v39  ;;  %v469_v43 = vmul.f32 -0.5, %v720_v39  ;;  %v472_v50 = vand.u32 2147483647, %v720_v39 }
 0x1e8   : > { %723 = vlog2.f32 %v466_v41  ;;  %v470_v47 = vadd.f32 1.0, %v469_v43  ;;  %vm473_vm0 = vcmp.lt.f32.partialorder %v472_v50, 0.0004427343 }
 0x1e9   : > { %v722_v40 = vpop.eup %721 }
 0x1ea   : > { %v475_v42 = vadd.f32 1.0, %v722_v40  ;;  %v478_v44 = vmul.f32 -0.5, %v722_v40  ;;  %v481_v54 = vand.u32 2147483647, %v722_v40  ;;  %v471_v55 = vmul.f32 %v720_v39, %v470_v47 }
 0x1ec   : > { %725 = vlog2.f32 %v475_v42  ;;  %v479_v51 = vadd.f32 1.0, %v478_v44  ;;  %vm482_vm1 = vcmp.lt.f32.partialorder %v481_v54, 0.0004427343 }
 0x1ee   : > { %v480_v58 = vmul.f32 %v722_v40, %v479_v51 }
 0x1f2   : > { %v724_v56 = vpop.eup %723 }
 0x1f3   : > { %v468_v60 = vmul.f32 0.6931472, %v724_v56 }
 0x1f5   : > { %v474_v63 = vsel %vm473_vm0, %v471_v55, %v468_v60 }
 0x1f6   : > { %v726_v59 = vpop.eup %725  ;;  %v484_v0 = vadd.f32 %v474_v63, %v456_v57 }
 0x1f7   : > { %v477_v62 = vmul.f32 0.6931472, %v726_v59 }
 0x1f8   : > { %487 = vst.msk [vmem:[%s928_s12] sm:$0xff] %vm486_vm2, %v484_v0 }
 0x1f9   : > { %v483_v1 = vsel %vm482_vm1, %v480_v58, %v477_v62 }
 0x1fa   : > { %v485_v2 = vadd.f32 %v483_v1, %v457_v61 }
 0x1fc   : > { %488 = vst.msk [vmem:[%s928_s12 + $0x8] sm:$0xff] %vm486_vm2, %v485_v2 }
 0x1fd PF: > { %p12_p11 = scmp.ge.s32.totalorder %s852_s19, 6   ;;  %s993_s15 = smov %s789_s16 }
 0x1fe   : > { %s994_s16 = smov %s862_s22  ;;  %s995_s17 = smov %s852_s19 }
 0x1ff   :  { %14 = sbr.rel (!%p12_p11) target bundleno = 2 (0x2), region = 140 }
 0x206   :  { %511 = vsyncpa [#allocation4], 1 }
 0x207   :  { %513 = vsyncpa [#allocation4 + $0x1], 1 }

// kernel: tpu_custom_call.1
= control target key start
LH: loop header
LB: loop body
LE: loop exit
PB: predicated region body
PF: predicated region fallthrough
CT: control target
= control target key end

     0   :  { %9 = vsyncpa [#allocation4], 0  ;;  %s835_s15 = smov 0   ;;  %s837_s16 = smov 0   ;;  %s977_s0 = inlined_call_operand.vmem [shape: bf16[2,64,128], index: 0, kind: input, shape index: {}]   ;;  %s978_s1 = inlined_call_operand.hbm [shape: bf16[128,256], index: 1, kind: input, shape index: {}]   ;;  %s979_s2 = inlined_call_operand.vmem [shape: f32[1,256], index: 2, kind: input, shape index: {}]   ;;  %s980_s3 = inlined_call_operand.vmem [shape: f32[64,1], index: 3, kind: input, shape index: {}]   ;;  %s981_s4 = inlined_call_operand.vmem [shape: f32[64,1], index: 4, kind: output, shape index: {}]  }
   0x1   :  { %s839_s17 = smov 0  }
   0x2 LB: > { %s589_s18 = sadd.s32 4294967295, %s793_s17   ;;  %s852_s19 = sadd.s32 1, %s793_s17   ;;  %s793_s17 = sphi %s839_s17, %s995_s17   ;;  %s789_s16 = sphi %s837_s16, %s994_s16   ;;  %s785_s15 = sphi %s835_s15, %s993_s15  }
   0x3   : > { %s19_s20 = ssub.s32 %s793_s17, %s852_s19  ;;  %s22_s21 = sadd.s32 1, %s789_s16 }
   0x4   : > { %p20_p0 = scmp.eq.s32.totalorder %s19_s20, 0  ;;  %p29_p1 = scmp.ne.s32.totalorder %s789_s16, %s785_s15 }
   0x5   : > { %p30_p2 = scmp.eq.s32.totalorder %s793_s17, 0  ;;  %p591_p3 = scmp.ge.s32.totalorder %s793_s17, 1 }
   0x6   : > { %s862_s22 = scalar_select %p20_p0, %s789_s16, %s22_s21  }
   0x7   : > { %p864_p4 = por %p30_p2, %p29_p1  ;;  %p140_p5 = scmp.lt.s32.totalorder %s793_s17, 5 }
   0x8   : > { %p871_p6 = scmp.eq.s32.totalorder %s589_s18, 0  ;;  %s807_s26 = smov [#allocation3]  }
   0x9   : > { %s985_s23 = scalar_select %p864_p4, 1, 0 }
   0xa   : > { %s986_s24 = scalar_select %p871_p6, 1, 0 }
   0xb   : > { %p875_p7 = pnand %p591_p3, %p140_p5  ;;  %s152_s27 = sshll.u32 %s807_s26, 4  ;;  %s153_s27 = int_to_ptr.vmem [resolvable:$true] %s152_s27 }
   0xc   : > { %s727_s5 = scalar_lea.hbm %s978_s1, 2048 }
   0xd   : > { %s987_s25 = scalar_select %p875_p7, 1, 0 }
   0xe   : > { %p654_p8 = pneg %p875_p7  ;;  %p728_p10 = scmp.ne.s32.totalorder %s978_s1, %s727_s5 }
   0xf   : > { %p734_p0 = scmp.lt.u32.totalorder %s727_s5, %s978_s1 }
  0x10   : > { %p883_p9 = pnand %p871_p6, %p654_p8 }
  0x12   : > { %p729_p11 = pneg %p883_p9 }
  0x14   : > { %p730_p12 = pnand %p729_p11, %p728_p10 }
  0x16   : > { %p731_p13 = pneg %p730_p12 }
  0x18   : > { %p736_p1 = pnand %p734_p0, %p731_p13 }
  0x1a   : > { %739 = shalt.err (!%p736_p1)
}
  0x1b   : > { %s740_s10 = scalar_lea.vmem %s153_s27, 2048  ;;  %p748_p8 = scmp.lt.s32.totalorder %s153_s27, %s153_s27 }
  0x1c   : > { %p741_p2 = scmp.ne.s32.totalorder %s153_s27, %s740_s10  ;;  %p749_p6 = scmp.lt.s32.totalorder %s740_s10, %s740_s10 }
  0x1e   : > { %p743_p3 = pnand %p741_p2, %p729_p11  ;;  %p750_p7 = por %p749_p6, %p748_p8 }
  0x20   : > { %p744_p5 = pneg %p743_p3 }
  0x22   : > { %p751_p4 = pnand %p750_p7, %p744_p5 }
  0x24   : > { %754 = shalt.err (!%p751_p4)
}
  0x25   : > { %s808_s11 = smov 128   ;;  %s809_s12 = smov 8  }
  0x26   : > { %657 = dma.hbm_to_vmem [thread:$0]  (!%p883_p9), %s978_s1, 2048, %s153_s27, [#allocation4], %s808_s11, %s808_s11, %s809_s12  }
  0x27   : > { %p593_p10 = scmp.ge.s32.totalorder %s793_s17, 4 }
  0x28   : > { %p989_p12 = scmp.ne.s32.totalorder (!%p593_p10), %s985_s23, 0 }
  0x29   : > { %165 = sbr.rel (%p593_p10) target bundleno = 55 (0x37), region = 24 }
  0x30   : > { %168 = sbr.rel (!%p989_p12) target bundleno = 55 (0x37), region = 28  ;;  %s170_s20 = sand.u32 (%p989_p12), 1, %s789_s16  }
  0x31   : > { %s619_s21 = sshll.u32 (%p989_p12), %s793_s17, 3  ;;  %s594_s26 = sshll.u32 (%p989_p12), %s170_s20, 4 }
  0x32   : > { %s175_s5 = scalar_lea.vmem (%p989_p12), %s977_s0, %s619_s21  ;;  %s172_s28 = scalar_lea.vmem (%p989_p12), [#allocation2], %s594_s26 }
  0x33   : > { %v191_v0 = vld [vmem:[%s175_s5] sm:$0xff] (%p989_p12)  }
  0x34   : > { %v195_v1 = vld [vmem:[%s175_s5 + $0x20] sm:$0xff] (%p989_p12)   ;;  %192 = vst [vmem:[%s172_s28] sm:$0xff] (%p989_p12), %v191_v0  }
  0x35   : > { %196 = vst [vmem:[%s172_s28 + $0x8] sm:$0xff] (%p989_p12), %v195_v1  }
  0x37 PF: > { %p990_p4 = scmp.ne.s32.totalorder %s987_s25, 0 }
  0x38   : > { %s244_s23 = sand.u32 (!%p990_p4), 1, %s785_s15   ;;  %p991_p6 = scmp.ne.s32.totalorder (!%p990_p4), %s986_s24, 0 }
  0x39   : > { %241 = sbr.rel (%p990_p4) target bundleno = 509 (0x1fd), region = 73  ;;  %s598_s27 = sshll.u32 (!%p990_p4), %s244_s23, 4 }
  0x3a   : > { %s246_s6 = scalar_lea.vmem (!%p990_p4), [#allocation2], %s598_s27 }
  0x40   : > { %780 = dma.done.wait (%p991_p6), [#allocation4], 2048  }
  0x41   : > { %782 = vsyncadd (%p991_p6), [#allocation4], 4294965248  ;;  %s600_s7 = sshll.u32 %s589_s18, 1  ;;  %v930_v2 = vld [vmem:[%s246_s6] sm:$0xf]  ;;  %v938_v6 = vmov 0.0  }
  0x42   : > { %p280_p7 = scmp.lt.s32.totalorder %s600_s7, 7  ;;  %v932_v3 = vld [vmem:[%s246_s6 + $0x4] sm:$0xf]  ;;  %v934_v4 = vld [vmem:[%s246_s6 + $0x8] sm:$0xf]  ;;  %v799_v7 = vmov 0.0  }
  0x43   : > { %v936_v5 = vld [vmem:[%s246_s6 + $0xc] sm:$0xf]  ;;  %s940_s17 = smov 0  }
  0x44   : > { %s997_s7 = smov (!%p280_p7, %s600_s7), 7 }
  0x45   : > { %s601_s8 = sshll.u32 %s997_s7, 3 }
  0x46   : > { %s923_s25 = scalar_lea.vmem %s980_s3, %s601_s8  ;;  %s928_s12 = scalar_lea.vmem %s981_s4, %s601_s8 }
  0x47 LB: >> { %v607_v8 = vcombine.low %v930_v2, %v932_v3  ;;  %s604_s18 = sshll.u32 %s805_s17, 7  ;;  %v608_v17 = vcombine.low %v934_v4, %v936_v5  ;;  %s301_s17 = sadd.s32 1, %s805_s17   ;;  %s805_s17 = sphi %s940_s17, %s301_s17   ;;  %v801_v7 = vphi %v799_v7, %v800_v7   ;;  %v797_v6 = vphi %v938_v6, %v992_v6  }
  0x48   : >> { %s949_s24 = sshra.s32 %s604_s18, 7  ;;  %p298_p9 = scmp.ge.s32.totalorder %s301_s17, 2  }
  0x49   : >> { %646 = vmatprep.mubr.bf16.mxu0 %v607_v8  ;;  %s605_s13 = sshll.u32 %s949_s24, 2  ;;  %s325_s26 = scalar_lea.vmem %s979_s2, %s949_s24  ;;  %v450_v45 = vld [vmem:[%s923_s25] sm:$0xff] (%p298_p9)  ;;  %v451_v46 = vld [vmem:[%s923_s25 + $0x8] sm:$0xff] (%p298_p9)  ;;  %vm486_vm2 = vcmask (%p298_p9), 7168  }
  0x4a   : >> { %s308_s14 = scalar_lea.vmem [#allocation3], %s605_s13  ;;  %v606_v18 = vld [vmem:[%s325_s26] ss:$0 sm:$0xff] }
  0x4b   : >> { %v711_v9 = vld [vmem:[%s308_s14] ss:$8 sps:$4 sm:$0xff]   ;;  %v712_v10 = vld [vmem:[%s308_s14 + $0x10] ss:$8 sps:$4 sm:$0xff]  }
  0x4c   : >> { %630 = vmatprep.subr.bf16.mxu0 %v711_v9  ;;  %v713_v11 = vld [vmem:[%s308_s14 + $0x20] ss:$8 sps:$4 sm:$0xff]   ;;  %v714_v12 = vld [vmem:[%s308_s14 + $0x30] ss:$8 sps:$4 sm:$0xff]  }
  0x4d   : >> { %631 = vmatpush3.bf16.msra.mxu0 %v711_v9  ;;  %v715_v13 = vld [vmem:[%s308_s14 + $0x40] ss:$8 sps:$4 sm:$0xff]   ;;  %v716_v14 = vld [vmem:[%s308_s14 + $0x50] ss:$8 sps:$4 sm:$0xff]  }
  0x4e   : >> { %632 = vmatprep.subr.bf16.mxu0 %v712_v10  ;;  %v717_v15 = vld [vmem:[%s308_s14 + $0x60] ss:$8 sps:$4 sm:$0xff]   ;;  %v718_v16 = vld [vmem:[%s308_s14 + $0x70] ss:$8 sps:$4 sm:$0xff]  }
  0x51   : >> { %633 = vmatpush3.bf16.msra.mxu0 %v712_v10 }
  0x52   : >> { %634 = vmatprep.subr.bf16.mxu0 %v713_v11 }
  0x55   : >> { %635 = vmatpush3.bf16.msra.mxu0 %v713_v11 }
  0x56   : >> { %636 = vmatprep.subr.bf16.mxu0 %v714_v12 }
  0x59   : >> { %637 = vmatpush3.bf16.msra.mxu0 %v714_v12 }
  0x5a   : >> { %638 = vmatprep.subr.bf16.mxu0 %v715_v13 }
  0x5d   : >> { %639 = vmatpush3.bf16.msra.mxu0 %v715_v13 }
  0x5e   : >> { %640 = vmatprep.subr.bf16.mxu0 %v716_v14 }
  0x61   : >> { %641 = vmatpush3.bf16.msra.mxu0 %v716_v14 }
  0x62   : >> { %642 = vmatprep.subr.bf16.mxu0 %v717_v15 }
  0x65   : >> { %643 = vmatpush3.bf16.msra.mxu0 %v717_v15 }
  0x66   : >> { %644 = vmatprep.subr.bf16.mxu0 %v718_v16 }
  0x69   : >> { %645 = vmatpush3.bf16.msra.mxu0 %v718_v16 }
  0x6c   : >> { %647 = vmatmul.mubr.bf16.vlgmr.msra.gmra.mrb[0].mxu0 %v608_v17 }
 0x13f   : >> { %v648_v19 = vpop.f32.mrb[0].mxu0 }
 0x140   : >> { %v436_v20 = vadd.f32 %v648_v19, %v606_v18  ;;  %v427_v21 = vpop.f32.mrb[1].mxu0 }
 0x141   : >> { %v428_v22 = vadd.f32 %v606_v18, %v427_v21  ;;  %v649_v23 = vpop.f32.mrb[2].mxu0 }
 0x142   : >> { %v439_v24 = vadd.f32 %v649_v23, %v606_v18  ;;  %v430_v25 = vpop.f32.mrb[3].mxu0 }
 0x143   : >> { %v431_v26 = vadd.f32 %v606_v18, %v430_v25  ;;  %v442_v27 = vmul.f32 %v436_v20, %v428_v22 }
 0x145   : >> { %444 = vadd.xlane.f32.xlu0 %v442_v27  ;;  %v443_v28 = vmul.f32 %v439_v24, %v431_v26 }
 0x149   : >> { %446 = vadd.xlane.f32.xlu0 %v443_v28 }
 0x1d2   : >> { %v445_v29 = vpop.xlane.xlu0 %444 }
 0x1d3   : >> { %v448_v30 = vadd.f32 %v801_v7, %v445_v29   ;;  %300 = sbr.rel (!%p298_p9) target bundleno = 71 (0x47), region = 129 }
 0x1d5   : >> { %v800_v7 = vmov %v448_v30   ;;  %v458_v33 = vand.u32 (%p298_p9), 2147483647, %v448_v30  ;;  %v452_v48 = vmax.f32 (%p298_p9), %v448_v30, 0.0  ;;  %v454_v49 = vmul.f32 (%p298_p9), %v450_v45, %v448_v30 }
 0x1d6   : >> { %v447_v31 = vpop.xlane.xlu0 %446 }
 0x1d7   : >> { %v449_v32 = vadd.f32 %v797_v6, %v447_v31   ;;  %v460_v35 = vsub.f32 (%p298_p9), 0.0, %v458_v33  ;;  %v456_v57 = vsub.f32 (%p298_p9), %v452_v48, %v454_v49 }
 0x1d9   : >> { %v992_v6 = vmov %v449_v32  ;;  %v459_v34 = vand.u32 (%p298_p9), 2147483647, %v449_v32  ;;  %v462_v37 = vmul.f32 (%p298_p9), 1.442695, %v460_v35  ;;  %v453_v52 = vmax.f32 (%p298_p9), %v449_v32, 0.0 }
 0x1da   : > { %v455_v53 = vmul.f32 %v451_v46, %v449_v32 }
 0x1db   : > { %v461_v36 = vsub.f32 0.0, %v459_v34  ;;  %719 = vpow2.f32 %v462_v37 }
 0x1dc   : > { %v457_v61 = vsub.f32 %v453_v52, %v455_v53 }
 0x1dd   : > { %v464_v38 = vmul.f32 1.442695, %v461_v36 }
 0x1df   : > { %721 = vpow2.f32 %v464_v38 }
 0x1e5   : > { %v720_v39 = vpop.eup %719 }
 0x1e6   : > { %v466_v41 = vadd.f32 1.0, %v720_v39  ;;  %v469_v43 = vmul.f32 -0.5, %v720_v39  ;;  %v472_v50 = vand.u32 2147483647, %v720_v39 }
 0x1e8   : > { %723 = vlog2.f32 %v466_v41  ;;  %v470_v47 = vadd.f32 1.0, %v469_v43  ;;  %vm473_vm0 = vcmp.lt.f32.partialorder %v472_v50, 0.0004427343 }
 0x1e9   : > { %v722_v40 = vpop.eup %721 }
 0x1ea   : > { %v475_v42 = vadd.f32 1.0, %v722_v40  ;;  %v478_v44 = vmul.f32 -0.5, %v722_v40  ;;  %v481_v54 = vand.u32 2147483647, %v722_v40  ;;  %v471_v55 = vmul.f32 %v720_v39, %v470_v47 }
 0x1ec   : > { %725 = vlog2.f32 %v475_v42  ;;  %v479_v51 = vadd.f32 1.0, %v478_v44  ;;  %vm482_vm1 = vcmp.lt.f32.partialorder %v481_v54, 0.0004427343 }
 0x1ee   : > { %v480_v58 = vmul.f32 %v722_v40, %v479_v51 }
 0x1f2   : > { %v724_v56 = vpop.eup %723 }
 0x1f3   : > { %v468_v60 = vmul.f32 0.6931472, %v724_v56 }
 0x1f5   : > { %v474_v63 = vsel %vm473_vm0, %v471_v55, %v468_v60 }
 0x1f6   : > { %v726_v59 = vpop.eup %725  ;;  %v484_v0 = vadd.f32 %v474_v63, %v456_v57 }
 0x1f7   : > { %v477_v62 = vmul.f32 0.6931472, %v726_v59 }
 0x1f8   : > { %487 = vst.msk [vmem:[%s928_s12] sm:$0xff] %vm486_vm2, %v484_v0 }
 0x1f9   : > { %v483_v1 = vsel %vm482_vm1, %v480_v58, %v477_v62 }
 0x1fa   : > { %v485_v2 = vadd.f32 %v483_v1, %v457_v61 }
 0x1fc   : > { %488 = vst.msk [vmem:[%s928_s12 + $0x8] sm:$0xff] %vm486_vm2, %v485_v2 }
 0x1fd PF: > { %p12_p11 = scmp.ge.s32.totalorder %s852_s19, 6   ;;  %s993_s15 = smov %s789_s16 }
 0x1fe   : > { %s994_s16 = smov %s862_s22  ;;  %s995_s17 = smov %s852_s19 }
 0x1ff   :  { %14 = sbr.rel (!%p12_p11) target bundleno = 2 (0x2), region = 140 }
 0x206   :  { %511 = vsyncpa [#allocation4], 1 }
 0x207   :  { %513 = vsyncpa [#allocation4 + $0x1], 1 }

</bundles_post_ra>
